<compile_context>
chip_gen: v5e
topology: v5e:2x2
jax: 0.10.0
libtpu: 0.0.40
codegen_flags: <defaults>
</compile_context>

<pallas_src>
import functools

import jax
import jax.numpy as jnp
from jax import lax
from jax.experimental import pallas as pl
from jax.experimental.pallas import tpu as pltpu


# Target bytes per (input or output) tile buffer.  With double-buffering of
# both sides this is ~16 MiB of scoped VMEM -- comfortably inside the explicit
# 32 MiB limit below and well within v7x's 64 MiB physical VMEM per core.
_TILE_BYTES = 4 * 1024 * 1024
_VMEM_LIMIT_BYTES = 32 * 1024 * 1024  # explicit, safe on v5e / v6e / v7x


def _itemsize(dtype):
    return jnp.dtype(dtype).itemsize


def _sublane_pack(dtype):
    # rows per packed sublane group: 8 (f32), 16 (bf16), 32 (int8)
    return 8 * max(1, 4 // _itemsize(dtype))


def _round_up(x, m):
    return -(-x // m) * m


# ----------------------------------------------------------------------------
# Kernels
# ----------------------------------------------------------------------------
def _copy_pad_rows_kernel(x_ref, o_ref, *, rows_in, tile_rows, n_tiles, value):
    """Dense right-pad: (1, tile_rows, 128) views of the flattened batch slab.

    Interior tiles are one unmasked full-block copy; the boundary / pure-pad
    tiles do a single full-tile select against the scalar pad value.
    """
    t = pl.program_id(0) % n_tiles          # tile index within this batch
    valid = rows_in - t * tile_rows         # rows of real data in this tile

    @pl.when(valid >= tile_rows)
    def _copy():
        o_ref[...] = x_ref[...]

    @pl.when(valid < tile_rows)
    def _boundary():
        rows = lax.broadcasted_iota(jnp.int32, o_ref.shape, 1)
        # Rows >= `valid` (possibly all of them) come from the pad value; any
        # garbage in the out-of-bounds part of x_ref is masked away here.
        o_ref[...] = jnp.where(rows < valid, x_ref[...],
                               jnp.asarray(value, dtype=o_ref.dtype))


def _copy_pad_rows_single_kernel(x_ref, o_ref, *, value):
    """Whole padded slab (possibly several batches) in one tile: static copy +
    static tail fill; each output row is written exactly once."""
    rows_in = x_ref.shape[1]
    o_ref[:, :rows_in, :] = x_ref[...]
    if o_ref.shape[1] > rows_in:
        o_ref[:, rows_in:, :] = jnp.full(
            (o_ref.shape[0], o_ref.shape[1] - rows_in, o_ref.shape[2]),
            value, dtype=o_ref.dtype)


def _copy_pad_flat_kernel(x_ref, o_ref, *, n_in, tile_cols, value):
    """Lane-dense right-pad for D % 128 != 0: the (B, S*D) flat view is tiled
    on the last axis in multiples of 128; boundary mask on flat element idx."""
    t = pl.program_id(0)
    valid = n_in - t * tile_cols

    @pl.when(valid >= tile_cols)
    def _copy():
        o_ref[...] = x_ref[...]

    @pl.when(valid < tile_cols)
    def _boundary():
        cols = lax.broadcasted_iota(jnp.int32, (1, tile_cols), 1)
        o_ref[...] = jnp.where(cols < valid, x_ref[...],
                               jnp.asarray(value, dtype=o_ref.dtype))


def _pad_general_kernel(x_ref, o_ref, *, ls, ld, value):
    """General last-two-dim padding; each output region is stored exactly once."""
    S, D = x_ref.shape[1], x_ref.shape[2]
    S_out, D_out = o_ref.shape[1], o_ref.shape[2]

    def fill(shape):
        return jnp.full(shape, value, dtype=o_ref.dtype)

    if ls > 0:                                  # top pad rows (full width)
        o_ref[:, :ls, :] = fill((1, ls, D_out))
    if ls + S < S_out:                          # bottom pad rows (full width)
        o_ref[:, ls + S:, :] = fill((1, S_out - ls - S, D_out))
    if ld > 0:                                  # left pad columns (data rows)
        o_ref[:, ls:ls + S, :ld] = fill((1, S, ld))
    if ld + D < D_out:                          # right pad columns (data rows)
        o_ref[:, ls:ls + S, ld + D:] = fill((1, S, D_out - ld - D))
    o_ref[:, ls:ls + S, ld:ld + D] = x_ref[...]


# ----------------------------------------------------------------------------
# Right-pad-on-S wrappers (the GBST case)
# ----------------------------------------------------------------------------
def _pad_right_rows(x3, r_in, r_out, value, tile_rows=None):
    """x3: (B, r_in, 128) flat-row view; returns (B, r_out, 128)."""
    B = x3.shape[0]
    dtype = x3.dtype
    isz = _itemsize(dtype)
    pack = _sublane_pack(dtype)

    if tile_rows is None:
        tr = max(pack, (_TILE_BYTES // (128 * isz) // pack) * pack)
    else:
        tr = max(pack, _round_up(int(tile_rows), pack))
    tr = min(tr, _round_up(r_out, pack))

    cost = pl.CostEstimate(flops=0, transcendentals=0,
                           bytes_accessed=(r_in + r_out) * B * 128 * isz)
    cparams = pltpu.CompilerParams(dimension_semantics=("parallel",),
                                   vmem_limit_bytes=_VMEM_LIMIT_BYTES)

    if tr >= r_out:
        # Whole padded slab fits one tile: block several batches together so a
        # grid step still moves ~_TILE_BYTES even for short sequences.
        slab = r_out * 128 * isz
        bb = max(1, min(B, _TILE_BYTES // max(slab, 1)))
        while B % bb:          # keep bb a divisor of B: no partial batch blocks
            bb -= 1
        kernel = functools.partial(_copy_pad_rows_single_kernel, value=value)
        return pl.pallas_call(
            kernel,
            out_shape=jax.ShapeDtypeStruct((B, r_out, 128), dtype),
            grid=(B // bb,),
            in_specs=[pl.BlockSpec((bb, r_in, 128), lambda i: (i, 0, 0))],
            out_specs=pl.BlockSpec((bb, r_out, 128), lambda i: (i, 0, 0)),
            compiler_params=cparams,
            cost_estimate=cost,
        )(x3)

    n_tiles = pl.cdiv(r_out, tr)
    last_in = max(pl.cdiv(r_in, tr) - 1, 0)
    kernel = functools.partial(_copy_pad_rows_kernel, rows_in=r_in,
                               tile_rows=tr, n_tiles=n_tiles, value=value)
    # The grid is flattened to one parallel axis so the v7x megacore split
    # always lands on the large tile axis even when B is 1-2.  Pure-pad tiles
    # clamp the input block index to the last valid block; consecutive steps
    # within a batch then request the same block, so the pipeline skips the
    # redundant input DMA.
    return pl.pallas_call(
        kernel,
        out_shape=jax.ShapeDtypeStruct((B, r_out, 128), dtype),
        grid=(B * n_tiles,),
        in_specs=[pl.BlockSpec(
            (1, tr, 128),
            lambda i: (i // n_tiles, jnp.minimum(i % n_tiles, last_in), 0))],
        out_specs=pl.BlockSpec((1, tr, 128),
                               lambda i: (i // n_tiles, i % n_tiles, 0)),
        compiler_params=cparams,
        cost_estimate=cost,
    )(x3)


def _pad_right_flat(x2, n_in, n_out, value, tile_cols=None):
    """x2: (B, n_in) flat view; returns (B, n_out) via lane-dense (B, tn) blocks."""
    B = x2.shape[0]
    dtype = x2.dtype
    isz = _itemsize(dtype)

    if tile_cols is None:
        tn = max(128, (_TILE_BYTES // (max(B, 1) * isz) // 128) * 128)
    else:
        tn = max(128, _round_up(int(tile_cols), 128))
    tn = min(tn, _round_up(n_out, 128))
    # NOTE: for extremely large B the minimum tile (B, 128) grows; real GBST
    # batches stay far below the VMEM limit set here.

    n_tiles = pl.cdiv(n_out, tn)
    last_in = max(pl.cdiv(n_in, tn) - 1, 0)
    kernel = functools.partial(_copy_pad_flat_kernel, n_in=n_in,
                               tile_cols=tn, value=value)
    return pl.pallas_call(
        kernel,
        out_shape=jax.ShapeDtypeStruct((B, n_out), dtype),
        grid=(n_tiles,),
        in_specs=[pl.BlockSpec((B, tn),
                               lambda t: (0, jnp.minimum(t, last_in)))],
        out_specs=pl.BlockSpec((B, tn), lambda t: (0, t)),
        compiler_params=pltpu.CompilerParams(
            dimension_semantics=("parallel",),
            vmem_limit_bytes=_VMEM_LIMIT_BYTES),
        cost_estimate=pl.CostEstimate(flops=0, transcendentals=0,
                                      bytes_accessed=(n_in + n_out) * B * isz),
    )(x2)


def _pad_right_seq(x, rs, value, *, tile_rows=None, tile_cols=None):
    """Right-pad the sequence dim only (the GBST case), lane-dense blocks."""
    B, S, D = x.shape
    s_out = S + rs
    n_in, n_out = S * D, s_out * D
    if n_in % 128 == 0 and n_out % 128 == 0:
        # Fully dense path: per-batch slab viewed as rows of 128 (free reshape).
        out = _pad_right_rows(x.reshape(B, n_in // 128, 128),
                              n_in // 128, n_out // 128, value, tile_rows)
    else:
        # Lane-dense 2-D flat path (covers D not a multiple of 128, e.g. the
        # D=32 GBST test shape); boundary handled by a flat-index mask.
        out = _pad_right_flat(x.reshape(B, n_in), n_in, n_out, value, tile_cols)
    return out.reshape(B, s_out, D)


# ----------------------------------------------------------------------------
# General (last-two-dim) padding
# ----------------------------------------------------------------------------
def _pad_general(x, padding, value):
    ld, rd, ls, rs = padding
    B, S, D = x.shape
    s_out, d_out = S + ls + rs, D + ld + rd
    isz = _itemsize(x.dtype)
    # Conservative double-buffered VMEM footprint of the per-batch slabs,
    # including lane/sublane layout padding.
    vmem_est = 2 * isz * (_round_up(S, 8) * _round_up(D, 128)
                          + _round_up(s_out, 8) * _round_up(d_out, 128))
    if vmem_est > 24 * 1024 * 1024:
        # TODO(synk): tile the general padding path on S instead of holding a
        # full per-batch slab; fall back to XLA's pad for large shapes so the
        # kernel stays safe on v7x's 64 MiB VMEM.
        return jnp.pad(x, ((0, 0), (ls, rs), (ld, rd)),
                       constant_values=value).astype(x.dtype)

    kernel = functools.partial(_pad_general_kernel, ls=ls, ld=ld, value=value)
    return pl.pallas_call(
        kernel,
        out_shape=jax.ShapeDtypeStruct((B, s_out, d_out), x.dtype),
        grid=(B,),
        in_specs=[pl.BlockSpec((1, S, D), lambda b: (b, 0, 0))],
        out_specs=pl.BlockSpec((1, s_out, d_out), lambda b: (b, 0, 0)),
        compiler_params=pltpu.CompilerParams(
            dimension_semantics=("parallel",),
            vmem_limit_bytes=_VMEM_LIMIT_BYTES),
        cost_estimate=pl.CostEstimate(
            flops=0, transcendentals=0,
            bytes_accessed=(B * S * D + B * s_out * d_out) * isz),
    )(x)


# ----------------------------------------------------------------------------
# Public API
# ----------------------------------------------------------------------------
def pallas_pad(x, padding, value=0.0, *, tile_rows=None, tile_cols=None):
    """Equivalent of torch.nn.functional.pad(x, padding, value=value) for a
    3-D (B, S, D) tensor, `padding` covering the last one or two dims:
        padding = (left_D, right_D[, left_S, right_S])   (PyTorch convention)
    """
    assert x.ndim == 3, "this kernel handles (B, S, D) tensors"
    padding = tuple(int(p) for p in padding)
    assert len(padding) in (2, 4)
    if len(padding) == 2:
        padding = padding + (0, 0)
    # TODO(synk): negative (cropping) F.pad values are not supported.
    assert min(padding) >= 0, "negative padding (cropping) not supported"
    ld, rd, ls, rs = padding

    if max(padding) == 0:
        return x
    if ld == 0 and rd == 0 and ls == 0:
        return _pad_right_seq(x, rs, value,
                              tile_rows=tile_rows, tile_cols=tile_cols)
    return _pad_general(x, padding, value)


class Padding:
    """Thin JAX wrapper mirroring the PyTorch module's interface."""

    def __init__(self, padding, value=0):
        self.padding = padding
        self.value = value

    def __call__(self, in_tensor):
        return pallas_pad(in_tensor, self.padding, value=self.value)


# ----------------------------------------------------------------------------
# Self-test
# ----------------------------------------------------------------------------
if __name__ == "__main__":
    k1, k2, k3 = jax.random.split(jax.random.PRNGKey(0), 3)

    # 1) GBST usage: F.pad(x, (0, 0, 0, 3)) — pad seq 13 -> 16 (block size 4).
    #    D=32 is not a multiple of 128 -> lane-dense flat (B, S*D) path.
    B, S, D = 2, 13, 32
    x = jax.random.normal(k1, (B, S, D), dtype=jnp.float32)
    mod = Padding((0, 0, 0, 3), value=0)
    out = jax.block_until_ready(mod(x))
    ref = jnp.pad(x, ((0, 0), (0, 3), (0, 0)), constant_values=0.0)
    assert out.shape == ref.shape and out.dtype == ref.dtype
    assert jnp.array_equal(out, ref), "mismatch vs reference pad (GBST case)"

    # 2) Flat path, forced small tile: interior copy tiles, a boundary (masked)
    #    tile and pure-pad tiles with a clamped input index.
    out2 = jax.block_until_ready(
        pallas_pad(x, (0, 0, 0, 19), value=-2.0, tile_cols=128))
    ref2 = jnp.pad(x, ((0, 0), (0, 19), (0, 0)), constant_values=-2.0)
    assert out2.shape == ref2.shape
    assert jnp.array_equal(out2, ref2), "mismatch vs reference pad (flat tiled)"

    # 3) Dense-row path, forced small tile: D=128 so the flat slab is
    #    128-aligned; interior / boundary / pure-pad tiles on a flattened grid.
    x2 = jax.random.normal(k2, (2, 70, 128), dtype=jnp.float32)
    out3 = jax.block_until_ready(
        pallas_pad(x2, (0, 0, 0, 58), value=-2.0, tile_rows=32))
    ref3 = jnp.pad(x2, ((0, 0), (0, 58), (0, 0)), constant_values=-2.0)
    assert out3.shape == ref3.shape
    assert jnp.array_equal(out3, ref3), "mismatch vs reference pad (dense tiled)"

    # 4) Dense-row path, default tile: single-tile + batch-blocked kernel.
    out4 = jax.block_until_ready(pallas_pad(x2, (0, 0, 0, 58), value=-2.0))
    assert jnp.array_equal(out4, ref3), "mismatch vs reference pad (dense single)"

    # 5) General path: pad both the feature and sequence dims.
    x3 = jax.random.normal(k3, (2, 13, 32), dtype=jnp.float32)
    out5 = jax.block_until_ready(pallas_pad(x3, (2, 1, 1, 3), value=1.5))
    ref5 = jnp.pad(x3, ((0, 0), (1, 3), (2, 1)), constant_values=1.5)
    assert out5.shape == ref5.shape
    assert jnp.array_equal(out5, ref5), "mismatch vs reference pad (general case)"

    # 6) bf16 GBST-style pad (dtype/pack sanity).
    xb = x.astype(jnp.bfloat16)
    out6 = jax.block_until_ready(pallas_pad(xb, (0, 0, 0, 3), value=0))
    ref6 = jnp.pad(xb, ((0, 0), (0, 3), (0, 0)), constant_values=0)
    assert out6.dtype == jnp.bfloat16
    assert jnp.array_equal(out6, ref6), "mismatch vs reference pad (bf16 case)"

    print("KERNEL_OK")
</pallas_src>

<mosaic_0001>
module attributes {stable_mosaic.version = 11 : i64} {
  func.func @_copy_pad_flat_kernel(%arg0: i32, %arg1: memref<2x512xf32, #tpu.memory_space<vmem>>, %arg2: memref<2x512xf32, #tpu.memory_space<vmem>>) attributes {dimension_semantics = [#tpu.dimension_semantics<parallel>], iteration_bounds = array<i64: 1>, scalar_prefetch = 0 : i64, scratch_operands = 0 : i64, tpu.core_type = #tpu.core_type<tc>, window_params = [{transform_indices = @transform_0, window_bounds = array<i64: 2, 512>}, {transform_indices = @transform_1, window_bounds = array<i64: 2, 512>}]} {
    %c512_i32 = arith.constant 512 : i32
    %0 = arith.muli %arg0, %c512_i32 : i32
    %c416_i32 = arith.constant 416 : i32
    %1 = arith.subi %c416_i32, %0 : i32
    %c512_i32_0 = arith.constant 512 : i32
    %2 = arith.cmpi sge, %1, %c512_i32_0 : i32
    %3 = arith.extui %2 : i1 to i32
    %c0_i32 = arith.constant 0 : i32
    %4 = arith.cmpi ne, %3, %c0_i32 : i32
    scf.if %4 {
      %c0 = arith.constant 0 : index
      %c0_3 = arith.constant 0 : index
      %8 = vector.load %arg1[%c0, %c0_3] : memref<2x512xf32, #tpu.memory_space<vmem>>, vector<2x512xf32>
      %c0_4 = arith.constant 0 : index
      %c0_5 = arith.constant 0 : index
      %9 = vector.load %arg2[%c0_4, %c0_5] : memref<2x512xf32, #tpu.memory_space<vmem>>, vector<2x512xf32>
      tpu.vector_store %arg2[%c0_4, %c0_5], %8 {strides = array<i32>} : memref<2x512xf32, #tpu.memory_space<vmem>>, vector<2x512xf32>,
    } else {
    }
    %c512_i32_1 = arith.constant 512 : i32
    %5 = arith.cmpi slt, %1, %c512_i32_1 : i32
    %6 = arith.extui %5 : i1 to i32
    %c0_i32_2 = arith.constant 0 : i32
    %7 = arith.cmpi ne, %6, %c0_i32_2 : i32
    scf.if %7 {
      %8 = tpu.iota {dimensions = array<i32: 1>} : vector<1x512xi32>
      %9 = vector.broadcast %1 : i32 to vector<1x512xi32>
      %10 = arith.cmpi slt, %8, %9 : vector<1x512xi32>
      %c0 = arith.constant 0 : index
      %c0_3 = arith.constant 0 : index
      %11 = vector.load %arg1[%c0, %c0_3] : memref<2x512xf32, #tpu.memory_space<vmem>>, vector<2x512xf32>
      %cst = arith.constant 0.000000e+00 : f32
      %12 = vector.shape_cast %10 : vector<1x512xi1> to vector<1x512xi1>
      %13 = vector.broadcast %12 : vector<1x512xi1> to vector<2x512xi1>
      %14 = vector.broadcast %cst : f32 to vector<2x512xf32>
      %15 = arith.select %13, %11, %14 : vector<2x512xi1>, vector<2x512xf32>
      %c0_4 = arith.constant 0 : index
      %c0_5 = arith.constant 0 : index
      %16 = vector.load %arg2[%c0_4, %c0_5] : memref<2x512xf32, #tpu.memory_space<vmem>>, vector<2x512xf32>
      tpu.vector_store %arg2[%c0_4, %c0_5], %15 {strides = array<i32>} : memref<2x512xf32, #tpu.memory_space<vmem>>, vector<2x512xf32>,
    } else {
    }
    return
  }
  func.func @transform_0(%arg0: i32) -> (i32, i32) {
    %c0_i32 = arith.constant 0 : i32
    %0 = arith.minsi %arg0, %c0_i32 : i32
    %c0_i32_0 = arith.constant 0 : i32
    %c0_i32_1 = arith.constant 0 : i32
    return %c0_i32_0, %0 : i32, i32
  }
  func.func @transform_1(%arg0: i32) -> (i32, i32) {
    %c0_i32 = arith.constant 0 : i32
    %c0_i32_0 = arith.constant 0 : i32
    return %c0_i32, %arg0 : i32, i32
  }
}

</mosaic_0001>

<bundles_post_ra>
// kernel: tpu_custom_call.1
= control target key start
LH: loop header
LB: loop body
LE: loop exit
PB: predicated region body
PF: predicated region fallthrough
CT: control target
= control target key end

     0   :  { %6 = vsyncpa [#allocation3], 0  ;;  %s172_s0 = inlined_call_operand.hbm [shape: f32[2,416], index: 0, kind: input, shape index: {}]   ;;  %s173_s1 = inlined_call_operand.hbm [shape: f32[2,512], index: 1, kind: output, shape index: {}]  }
   0x1   :  { %7 = vsyncpa [#allocation4], 0  ;;  %s13_s8 = sshll.u32 %s172_s0, 4  ;;  %s154_s9 = smov [#allocation2]   ;;  %s14_s8 = int_to_ptr.hbm [resolvable:$true] %s13_s8 }
   0x2   :  { %s15_s10 = sshll.u32 %s154_s9, 4  ;;  %s16_s10 = int_to_ptr.vmem [resolvable:$true] %s15_s10 }
   0x3   :  { %18 = dma.hbm_to_vmem [thread:$0]  %s14_s8, 128, %s16_s10, [#allocation3]  }
   0x4   :  { %150 = dma.done.wait [#allocation3], 128  }
   0x5   :  { %151 = vsyncadd [#allocation3], 4294967168  ;;  %v35_v0 = vlaneseq  ;;  %v45_v2 = vld [vmem:[#allocation2] sm:$0xff]  ;;  %vm75_vm1 = vcmask 1041408   ;;  %vm77_vm2 = vcmask 1045508   ;;  %s155_s0 = smov [#allocation5]  }
   0x6   :  { %55 = vst [vmem:[#allocation1] ss:$4 sm:$0xff] %v45_v2  ;;  %s88_s11 = sshll.u32 %s155_s0, 4  ;;  %s90_s14 = sshll.u32 %s173_s1, 4  ;;  %vm79_vm3 = vcmask 1043456   ;;  %s89_s11 = int_to_ptr.vmem [resolvable:$true] %s88_s11  ;;  %s91_s14 = int_to_ptr.hbm [resolvable:$true] %s90_s14 }
   0x7   :  { %v36_v1 = vand.u32 127, %v35_v0 }
   0x9   :  { %v39_v3 = vadd.s32 384, %v36_v1 }
   0xb   :  { %vm44_vm0 = vcmp.lt.s32.totalorder %v39_v3, 416 }
   0xd   :  { %v57_v4 = vld.sshfl [vmem:[#allocation1 + $0x8] sm:$0xff pattern:$0x73625140]  ;;  %v58_v5 = vld.sshfl [vmem:[#allocation1 + $0x10] sm:$0xff pattern:$0x73625140] }
   0xe   :  { %v59_v6 = vld.sshfl [vmem:[#allocation1 + $0x18] sm:$0xff pattern:$0x73625140]  ;;  %v72_v8 = vrot.slane %v57_v4, 6  ;;  %v73_v9 = vrot.slane %v58_v5, 4 }
   0xf   :  { %v67_v7 = vsel %vm44_vm0, %v59_v6, 0.0  ;;  %v56_v10 = vld.sshfl [vmem:[#allocation1] sm:$0xff pattern:$0x73625140] }
  0x10   :  { %v74_v11 = vrot.slane %v67_v7, 2  ;;  %v76_v12 = vsel %vm75_vm1, %v56_v10, %v72_v8 }
  0x12   :  { %v78_v13 = vsel %vm77_vm2, %v73_v9, %v74_v11 }
  0x13   :  { %v80_v14 = vsel %vm79_vm3, %v76_v12, %v78_v13 }
  0x14   :  { %82 = vst [vmem:[#allocation5] sm:$0xff] %v80_v14 }
  0x15   :  { %93 = dma.vmem_to_hbm [thread:$0]  %s89_s11, 128, %s91_s14, [#allocation4]  }
  0x16   :  { %152 = dma.done.wait [#allocation4], 128  }
  0x17   :  { %153 = vsyncadd [#allocation4], 4294967168 }
  0x18   :  { %98 = vsyncpa [#allocation3], 1 }
  0x19   :  { %99 = vsyncpa [#allocation4], 1 }

</bundles_post_ra>
